<compile_context>
chip_gen: v7x
topology: tpu7x:2x2x1
jax: 0.10.0
libtpu: 0.0.40
codegen_flags: <defaults>
</compile_context>

<pallas_src>
import jax
import jax.numpy as jnp
from jax.experimental import pallas as pl
from jax.experimental.pallas import tpu as pltpu

H = 32  # hidden width (n_hidden_1 == n_hidden_2 == 32)

# Packed-parameter column layout (sublane dim = 32 hidden units, lane dim = 40):
COL_W2 = 0        # cols [0, 32): w2^T  (fan_out, fan_in) -> ready for w2t @ h1
COL_W1 = H        # col 32: w1[0, :]   (in_dim == 1)
COL_B1 = H + 1    # col 33: b1
COL_B2 = H + 2    # col 34: b2
COL_W3 = H + 3    # col 35: w3[:, 0]   (out_dim == 1)
COL_B3 = H + 4    # col 36: b3 (replicated down sublanes; kernel reads [0:1])
N_COLS = H + 8    # pad to 40 columns


def fc_kernel(x_ref, p_ref, out_ref):
    x = x_ref[...]                               # (1, B_pad)  batch on lanes
    w2t = p_ref[:, COL_W2:COL_W2 + H]            # (32, 32) = w2^T
    w1c = p_ref[:, COL_W1:COL_W1 + 1]            # (32, 1)
    b1c = p_ref[:, COL_B1:COL_B1 + 1]            # (32, 1)
    b2c = p_ref[:, COL_B2:COL_B2 + 1]            # (32, 1)
    w3c = p_ref[:, COL_W3:COL_W3 + 1]            # (32, 1)
    b3 = p_ref[0:1, COL_B3:COL_B3 + 1]           # (1, 1)

    # layer1: K == 1 -> rank-1 outer product, VPU broadcast multiply (no MXU).
    h1 = jnp.maximum(w1c * x + b1c, 0.0)         # (32, B_pad)

    # layer2: the only real matmul -> MXU, lane-dense (32, B_pad) result.
    h2 = jnp.dot(w2t, h1,
                 preferred_element_type=jnp.float32,
                 precision=jax.lax.Precision.HIGHEST)
    h2 = jnp.maximum(h2 + b2c, 0.0)              # (32, B_pad)

    # layer3: N == 1 -> VPU multiply + sublane (XLU) reduction (no MXU).
    y = jnp.sum(h2 * w3c, axis=0, keepdims=True) + b3   # (1, B_pad)
    out_ref[...] = y.astype(out_ref.dtype)


def pack_params(params):
    """One-time init: fold all six parameter tensors into one (32, 40) f32 slab.

    w2 is stored pre-transposed and the vectors are stored as columns so the
    kernel's lane-major compute needs no in-kernel transposes.  Call this ONCE
    (per parameter update), not per forward call.
    """
    w1, b1 = params["w1"], params["b1"]   # (1, H), (1, H)
    w2, b2 = params["w2"], params["b2"]   # (H, H), (1, H)
    w3, b3 = params["w3"], params["b3"]   # (H, 1), (1, 1)
    packed = jnp.zeros((H, N_COLS), jnp.float32)
    packed = packed.at[:, COL_W2:COL_W2 + H].set(w2.T)
    packed = packed.at[:, COL_W1].set(w1[0])
    packed = packed.at[:, COL_B1].set(b1[0])
    packed = packed.at[:, COL_B2].set(b2[0])
    packed = packed.at[:, COL_W3].set(w3[:, 0])
    packed = packed.at[:, COL_B3].set(jnp.full((H,), b3[0, 0], jnp.float32))
    return packed


def fc_forward(x, packed):
    """x: (batch, 1) f32. packed: (32, 40) f32 pre-packed parameters."""
    n = x.shape[0]
    b_pad = ((n + 127) // 128) * 128          # lane-align the batch (50 -> 128)

    # Lane-major, padded input: (1, b_pad) with batch on lanes.
    x_t = jnp.zeros((1, b_pad), jnp.float32).at[:, :n].set(x.T)

    vmem_spec = pl.BlockSpec(memory_space=pltpu.MemorySpace.VMEM)
    y_t = pl.pallas_call(
        fc_kernel,
        out_shape=jax.ShapeDtypeStruct((1, b_pad), jnp.float32),
        in_specs=[vmem_spec, vmem_spec],
        out_specs=vmem_spec,
        cost_estimate=pl.CostEstimate(
            flops=2 * H * H * b_pad + 4 * H * b_pad,   # layer2 + layers 1/3
            transcendentals=0,
            bytes_accessed=4 * (b_pad + H * N_COLS + b_pad),
        ),
    )(x_t, packed)

    return y_t[:, :n].T                       # (batch, 1)


# jit once; pack_params is deliberately OUTSIDE this function (hoisted to init).
fc_forward_jit = jax.jit(fc_forward)


def init_params(key, in_dim, h1, h2, out_dim):
    """Deterministic init mimicking torch.nn.Linear default (U(-k, k), k=1/sqrt(fan_in))."""
    ks = jax.random.split(key, 6)

    def lin(kw, kb, fan_in, fan_out):
        bound = 1.0 / (fan_in ** 0.5)
        w = jax.random.uniform(kw, (fan_in, fan_out), jnp.float32, -bound, bound)
        b = jax.random.uniform(kb, (1, fan_out), jnp.float32, -bound, bound)
        return w, b

    w1, b1 = lin(ks[0], ks[1], in_dim, h1)
    w2, b2 = lin(ks[2], ks[3], h1, h2)
    w3, b3 = lin(ks[4], ks[5], h2, out_dim)
    return {"w1": w1, "b1": b1, "w2": w2, "b2": b2, "w3": w3, "b3": b3}


def fc_reference(x, p):
    hp = jax.lax.Precision.HIGHEST
    h1 = jnp.maximum(jnp.dot(x, p["w1"], precision=hp) + p["b1"], 0.0)
    h2 = jnp.maximum(jnp.dot(h1, p["w2"], precision=hp) + p["b2"], 0.0)
    return jnp.dot(h2, p["w3"], precision=hp) + p["b3"]


if __name__ == "__main__":
    # Shapes implied by the source script: x = ones((n, m)) with n=50, m=1.
    n, m = 50, 1               # batch=50, in_dim=1
    h1, h2, out_dim = H, H, 1

    key = jax.random.PRNGKey(0)
    _, k_p = jax.random.split(key)
    params = init_params(k_p, m, h1, h2, out_dim)
    packed = pack_params(params)   # one-time packing, reused across all calls

    x = jnp.ones((n, m), dtype=jnp.float32)

    y = fc_forward_jit(x, packed)
    y = jax.block_until_ready(y)

    y_ref = fc_reference(x, params)
    assert y.shape == (n, out_dim)
    assert jnp.allclose(y, y_ref, atol=1e-5, rtol=1e-5)

    print("KERNEL_OK")
</pallas_src>

<mosaic_0001>
module attributes {stable_mosaic.version = 11 : i64} {
  func.func @fc_kernel(%arg0: memref<1x128xf32, #tpu.memory_space<vmem>>, %arg1: memref<32x40xf32, #tpu.memory_space<vmem>>, %arg2: memref<1x128xf32, #tpu.memory_space<vmem>>) attributes {dimension_semantics = [], scalar_prefetch = 0 : i64, scratch_operands = 0 : i64, tpu.core_type = #tpu.core_type<tc>} {
    %c0 = arith.constant 0 : index
    %c0_0 = arith.constant 0 : index
    %0 = vector.load %arg0[%c0, %c0_0] : memref<1x128xf32, #tpu.memory_space<vmem>>, vector<1x128xf32>
    %c0_1 = arith.constant 0 : index
    %c0_2 = arith.constant 0 : index
    %1 = vector.load %arg1[%c0_1, %c0_2] : memref<32x40xf32, #tpu.memory_space<vmem>>, vector<32x32xf32>
    %c0_3 = arith.constant 0 : index
    %c32 = arith.constant 32 : index
    %2 = vector.load %arg1[%c0_3, %c32] : memref<32x40xf32, #tpu.memory_space<vmem>>, vector<32x1xf32>
    %c0_4 = arith.constant 0 : index
    %c33 = arith.constant 33 : index
    %3 = vector.load %arg1[%c0_4, %c33] : memref<32x40xf32, #tpu.memory_space<vmem>>, vector<32x1xf32>
    %c0_5 = arith.constant 0 : index
    %c34 = arith.constant 34 : index
    %4 = vector.load %arg1[%c0_5, %c34] : memref<32x40xf32, #tpu.memory_space<vmem>>, vector<32x1xf32>
    %c0_6 = arith.constant 0 : index
    %c35 = arith.constant 35 : index
    %5 = vector.load %arg1[%c0_6, %c35] : memref<32x40xf32, #tpu.memory_space<vmem>>, vector<32x1xf32>
    %c0_7 = arith.constant 0 : index
    %c36 = arith.constant 36 : index
    %6 = vector.load %arg1[%c0_7, %c36] : memref<32x40xf32, #tpu.memory_space<vmem>>, vector<1x1xf32>
    %7 = vector.broadcast %2 : vector<32x1xf32> to vector<32x128xf32>
    %8 = vector.broadcast %0 : vector<1x128xf32> to vector<32x128xf32>
    %9 = arith.mulf %7, %8 : vector<32x128xf32>
    %10 = vector.broadcast %3 : vector<32x1xf32> to vector<32x128xf32>
    %11 = arith.addf %9, %10 : vector<32x128xf32>
    %cst = arith.constant 0.000000e+00 : f32
    %12 = vector.broadcast %cst : f32 to vector<32x128xf32>
    %13 = arith.maximumf %11, %12 : vector<32x128xf32>
    %cst_8 = arith.constant dense<0.000000e+00> : vector<32x128xf32>
    %14 = tpu.matmul %1, %13, %cst_8 {dimension_numbers = #tpu.dot_dimension_numbers<[1], [0], [0], [1], [0, 0, 1, 1], [], []>, precision = #tpu.contract_precision<fp32>} : vector<32x32xf32>, vector<32x128xf32>, vector<32x128xf32> -> vector<32x128xf32>
    %15 = vector.broadcast %4 : vector<32x1xf32> to vector<32x128xf32>
    %16 = arith.addf %14, %15 : vector<32x128xf32>
    %cst_9 = arith.constant 0.000000e+00 : f32
    %17 = vector.broadcast %cst_9 : f32 to vector<32x128xf32>
    %18 = arith.maximumf %16, %17 : vector<32x128xf32>
    %19 = vector.broadcast %5 : vector<32x1xf32> to vector<32x128xf32>
    %20 = arith.mulf %18, %19 : vector<32x128xf32>
    %cst_10 = arith.constant dense<0.000000e+00> : vector<128xf32>
    %21 = vector.multi_reduction <add>, %20, %cst_10 [0] : vector<32x128xf32> to vector<128xf32>
    %22 = vector.shape_cast %21 : vector<128xf32> to vector<1x128xf32>
    %23 = vector.broadcast %6 : vector<1x1xf32> to vector<1x128xf32>
    %24 = arith.addf %22, %23 : vector<1x128xf32>
    %c0_11 = arith.constant 0 : index
    %c0_12 = arith.constant 0 : index
    %25 = vector.load %arg2[%c0_11, %c0_12] : memref<1x128xf32, #tpu.memory_space<vmem>>, vector<1x128xf32>
    tpu.vector_store %arg2[%c0_11, %c0_12], %24 {strides = array<i32>} : memref<1x128xf32, #tpu.memory_space<vmem>>, vector<1x128xf32>,
    return
  }
}

</mosaic_0001>

<bundles_post_ra>
// kernel: fc_forward.1
= control target key start
LH: loop header
LB: loop body
LE: loop exit
PB: predicated region body
PF: predicated region fallthrough
CT: control target
= control target key end

     0   :  { %7 = vsyncpa [#allocation3], 0  ;;  %s1017_s9 = smov [#allocation2]   ;;  %s1115_s0 = inlined_call_operand.vmem [shape: f32[1,128], index: 0, kind: input, shape index: {}]   ;;  %s1116_s1 = inlined_call_operand.hbm [shape: f32[32,40], index: 1, kind: input, shape index: {}]   ;;  %s1117_s2 = inlined_call_operand.vmem [shape: f32[1,128], index: 2, kind: output, shape index: {}]  }
   0x1   :  { %s15_s10 = sshll.u32 %s1017_s9, 4  ;;  %s993_s13 = scalar_lea.hbm %s1116_s1, 512  ;;  %s16_s10 = int_to_ptr.vmem [resolvable:$true] %s15_s10 }
   0x2   :  { %p994_p0 = scmp.ne.s32.totalorder %s1116_s1, %s993_s13  ;;  %p997_p1 = scmp.lt.u32.totalorder %s993_s13, %s1116_s1 }
   0x4   :  { %p999_p2 = pnand %p997_p1, %p994_p0 }
   0x6   :  { %1002 = shalt.err (!%p999_p2)
}
   0x7   :  { %s1003_s18 = scalar_lea.vmem %s16_s10, 512  ;;  %p1008_p4 = scmp.lt.s32.totalorder %s16_s10, %s16_s10 }
   0x8   :  { %p1004_p3 = scmp.ne.s32.totalorder %s16_s10, %s1003_s18  ;;  %p1009_p5 = scmp.lt.s32.totalorder %s1003_s18, %s1003_s18 }
   0xa   :  { %p1010_p6 = por %p1009_p5, %p1008_p4 }
   0xc   :  { %p1011_p7 = pnand %p1010_p6, %p1004_p3 }
   0xe   :  { %1014 = shalt.err (!%p1011_p7)
}
   0xf   :  { %s1018_s19 = smov 128   ;;  %s1019_s20 = smov 8  }
  0x10   :  { %21 = dma.hbm_to_vmem [thread:$0]  %s1116_s1, 512, %s16_s10, [#allocation3], %s1018_s19, %s1018_s19, %s1019_s20  }
  0x11   :  { %1015 = dma.done.wait [#allocation3], 512  }
  0x12   :  { %1016 = vsyncadd [#allocation3], 4294966784  ;;  %v1020_v0 = vmov 33   ;;  %v1021_v1 = vmov 32   ;;  %v26_v2 = vld [vmem:[#allocation2] sm:$0xff]  ;;  %v27_v3 = vld [vmem:[#allocation2 + $0x8] sm:$0xff] }
  0x13   :  { %983 = vset.pattern.permute.xlu1 %v1020_v0  ;;  %982 = vset.pattern.permute.xlu0 %v1021_v1  ;;  %v28_v4 = vld [vmem:[#allocation2 + $0x10] sm:$0xff]  ;;  %v29_v5 = vld [vmem:[#allocation2 + $0x18] sm:$0xff]  ;;  %vm101_vm0 = vcmask 261120   ;;  %v1022_v15 = vmov 34   ;;  %v1023_v16 = vmov 35   ;;  %v1024_v17 = vmov 36  }
  0x14   :  { %62 = vperm.xlu1 %983, %v26_v2   ;;  %33 = vperm.xlu0 %982, %v26_v2   ;;  %v102_v6 = vsel %vm101_vm0, %v26_v2, 0  ;;  %v104_v8 = vsel %vm101_vm0, %v27_v3, 0  ;;  %v106_v10 = vsel %vm101_vm0, %v28_v4, 0  ;;  %v108_v12 = vsel %vm101_vm0, %v29_v5, 0  ;;  %v30_v18 = vld [vmem:[#allocation2] sm:$0x1] }
  0x15   :  { %v1052_v7 = vand.u32 4294901760, %v102_v6  ;;  %v769_v19 = vld [vmem:[%s1115_s0] ss:$0 sm:$0xff]  ;;  %v1062_v28 = vand.u32 4294901760, %v104_v8  ;;  %v1064_v32 = vand.u32 4294901760, %v106_v10  ;;  %v1071_v38 = vand.u32 4294901760, %v108_v12 }
  0x17   :  { %v1055_v9 = vsub.f32 %v102_v6, %v1052_v7  ;;  %v1069_v36 = vsub.f32 %v104_v8, %v1062_v28  ;;  %v1074_v40 = vsub.f32 %v106_v10, %v1064_v32  ;;  %v1083_v51 = vsub.f32 %v108_v12, %v1071_v38 }
  0x18   :  { %66 = vperm.xlu1 %983, %v27_v3   ;;  %38 = vperm.xlu0 %982, %v27_v3  }
  0x19   :  { %v181_v11 = vand.u32 4294901760, %v1055_v9  ;;  %v191_v48 = vand.u32 4294901760, %v1069_v36  ;;  %v201_v56 = vand.u32 4294901760, %v1074_v40  ;;  %v211_v61 = vand.u32 4294901760, %v1083_v51 }
  0x1b   :  { %v182_v13 = vsub.f32 %v1055_v9, %v181_v11  ;;  %868 = vmatprep.mubr.f32.mxu0 %v181_v11  ;;  %v192_v58 = vsub.f32 %v1069_v36, %v191_v48  ;;  %v212_v10 = vsub.f32 %v1083_v51, %v211_v61 }
  0x1c   :  { %984 = vset.pattern.permute.xlu1 %v1021_v1  ;;  %43 = vperm.xlu0 %982, %v28_v4  }
  0x1d   :  { %48 = vperm.xlu1 %984, %v29_v5   ;;  %v183_v14 = vand.u32 4294901760, %v182_v13 }
  0x1f   :  { %826 = vmatprep.mubr.f32.mxu1 %v183_v14 }
  0x20   :  { %985 = vset.pattern.permute.xlu0 %v1020_v0 }
  0x21   :  { %986 = vset.pattern.permute.xlu1 %v1020_v0  ;;  %70 = vperm.xlu0 %985, %v28_v4  }
  0x22   :  { %74 = vperm.xlu1 %986, %v29_v5  }
  0x25   :  { %988 = vset.pattern.permute.xlu0 %v1022_v15 }
  0x26   :  { %987 = vset.pattern.permute.xlu1 %v1022_v15  ;;  %90 = vperm.xlu0 %988, %v27_v3  }
  0x27   :  { %86 = vperm.xlu1 %987, %v26_v2  }
  0x2a   :  { %989 = vset.pattern.permute.xlu0 %v1023_v16 }
  0x2b   :  { %94 = vperm.xlu1 %987, %v28_v4   ;;  %729 = vperm.xlu0 %989, %v26_v2   ;;  %v202_v2 = vsub.f32 %v1074_v40, %v201_v56 }
  0x2d   :  { %v203_v12 = vand.u32 4294901760, %v202_v2 }
  0x2f   :  { %98 = vperm.xlu1 %987, %v29_v5   ;;  %741 = vperm.xlu0 %989, %v29_v5  }
  0x33   :  { %990 = vset.pattern.permute.xlu1 %v1023_v16  ;;  %992 = vset.pattern.permute.xlu0 %v1024_v17  ;;  %v213_v16 = vand.u32 4294901760, %v212_v10 }
  0x34   :  { %733 = vperm.xlu1 %990, %v27_v3   ;;  %v193_v3 = vand.u32 4294901760, %v192_v58 }
  0x38   :  { %737 = vperm.xlu1 %990, %v28_v4  }
  0x3c   :  { %991 = vset.pattern.permute.xlu1 %v1024_v17 }
  0x3d   :  { %759 = vperm.xlu1 %991, %v30_v18  }
  0x93   :  { %v63_v20 = vpop.permute.xlu1 %62  ;;  %v34_v21 = vpop.permute.xlu0 %33 }
  0x94   :  { %v57_v22 = vmul.f32 %v769_v19, %v34_v21 }
  0x96   :  { %v77_v23 = vadd.f32 %v63_v20, %v57_v22 }
  0x97   :  { %v67_v24 = vpop.permute.xlu1 %66  ;;  %v39_v25 = vpop.permute.xlu0 %38 }
  0x98   :  { %v81_v26 = vmax.f32 %v77_v23, 0.0  ;;  %v58_v27 = vmul.f32 %v769_v19, %v39_v25 }
  0x9a   :  { %v111_v29 = vand.u32 4294901760, %v81_v26  ;;  %v78_v30 = vadd.f32 %v67_v24, %v58_v27 }
  0x9b   :  { %v44_v31 = vpop.permute.xlu0 %43 }
  0x9c   :  { %v1066_v33 = vsub.f32 %v81_v26, %v111_v29  ;;  %v82_v34 = vmax.f32 %v78_v30, 0.0  ;;  %v49_v35 = vpop.permute.xlu1 %48  ;;  %v59_v39 = vmul.f32 %v769_v19, %v44_v31 }
  0x9d   :  { %v60_v43 = vmul.f32 %v769_v19, %v49_v35 }
  0x9e   :  { %v114_v37 = vand.u32 4294901760, %v82_v34  ;;  %v222_v45 = vand.u32 4294901760, %v1066_v33 }
  0xa0   :  { %v1076_v41 = vpack.c.bf16 %v114_v37, %v111_v29  ;;  %v228_v42 = vsub.f32 %v82_v34, %v114_v37  ;;  %v71_v44 = vpop.permute.xlu0 %70  ;;  %v223_v54 = vsub.f32 %v1066_v33, %v222_v45 }
  0xa1   :  { %v79_v46 = vadd.f32 %v71_v44, %v59_v39  ;;  %v75_v47 = vpop.permute.xlu1 %74 }
  0xa2   :  { %v80_v49 = vadd.f32 %v75_v47, %v60_v43  ;;  %903 = vmatprep.subr.bf16.mxu1 %v1076_v41  ;;  %927 = vmatprep.subr.bf16.mxu0 %v1076_v41  ;;  %v229_v50 = vand.u32 4294901760, %v228_v42  ;;  %v224_v1 = vand.u32 4294901760, %v223_v54  ;;  %v918_v19 = vpack.c.bf16 %v228_v42, %v1066_v33 }
  0xa3   :  { %v83_v52 = vmax.f32 %v79_v46, 0.0  ;;  %905 = vmatpush3.bf16.msra.mxu1 %v1076_v41  ;;  %929 = vmatpush3.bf16.msra.mxu0 %v1076_v41 }
  0xa4   :  { %v84_v53 = vmax.f32 %v80_v49, 0.0  ;;  %v230_v55 = vsub.f32 %v228_v42, %v229_v50  ;;  %v934_v6 = vpack.c.bf16 %v229_v50, %v222_v45 }
  0xa5   :  { %v117_v57 = vand.u32 4294901760, %v83_v52  ;;  %v91_v23 = vpop.permute.xlu0 %90 }
  0xa6   :  { %v120_v59 = vand.u32 4294901760, %v84_v53  ;;  %v231_v60 = vand.u32 4294901760, %v230_v55  ;;  %v87_v21 = vpop.permute.xlu1 %86 }
  0xa7   :  { %v235_v62 = vsub.f32 %v83_v52, %v117_v57 }
  0xa8   :  { %v906_v63 = vpack.c.bf16 %v120_v59, %v117_v57  ;;  %v242_v0 = vsub.f32 %v84_v53, %v120_v59  ;;  %v910_v5 = vpack.c.bf16 %v231_v60, %v224_v1 }
  0xa9   :  { %v236_v4 = vand.u32 4294901760, %v235_v62 }
  0xaa   :  { %907 = vmatprep.subr.bf16.mxu1 %v906_v63  ;;  %931 = vmatprep.subr.bf16.mxu0 %v906_v63  ;;  %v243_v8 = vand.u32 4294901760, %v242_v0  ;;  %v922_v20 = vpack.c.bf16 %v242_v0, %v235_v62  ;;  %v95_v22 = vpop.permute.xlu1 %94  ;;  %v730_v34 = vpop.permute.xlu0 %729 }
  0xab   :  { %909 = vmatpush3.bf16.msra.mxu1 %v906_v63  ;;  %933 = vmatpush3.bf16.msra.mxu0 %v906_v63  ;;  %v237_v11 = vsub.f32 %v235_v62, %v236_v4 }
  0xac   :  { %911 = vmatprep.subr.bf16.mxu1 %v910_v5  ;;  %935 = vmatprep.subr.bf16.mxu0 %v934_v6  ;;  %v244_v13 = vsub.f32 %v242_v0, %v243_v8  ;;  %v938_v15 = vpack.c.bf16 %v243_v8, %v236_v4 }
  0xad   :  { %v238_v14 = vand.u32 4294901760, %v237_v11 }
  0xae   :  { %827 = vmatmul.mubr.f32.vlgmr.msra.gmra.mrb[0].mxu1 %v193_v3  ;;  %869 = vmatmul.mubr.f32.vlgmr.msra.gmra.mrb[0].mxu0 %v191_v48  ;;  %v245_v17 = vand.u32 4294901760, %v244_v13  ;;  %v99_v24 = vpop.permute.xlu1 %98  ;;  %v742_v49 = vpop.permute.xlu0 %741 }
  0xaf   :  { %913 = vmatpush3.bf16.msra.mxu1 %v910_v5  ;;  %937 = vmatpush3.bf16.msra.mxu0 %v934_v6 }
  0xb0   :  { %939 = vmatprep.subr.bf16.mxu0 %v938_v15  ;;  %829 = vmatprep.mubr.f32.mxu1 %v203_v12  ;;  %v914_v18 = vpack.c.bf16 %v245_v17, %v238_v14 }
  0xb1   :  { %871 = vmatprep.mubr.f32.mxu0 %v201_v56 }
  0xb2   :  { %830 = vmatmul.mubr.f32.gmra.mrb[2].mxu1 %v213_v16  ;;  %915 = vmatprep.subr.bf16.mxu1 %v914_v18 }
  0xb3   :  { %872 = vmatmul.mubr.f32.gmra.mrb[2].mxu0 %v211_v61  ;;  %917 = vmatpush3.bf16.msra.mxu1 %v914_v18 }
  0xb4   :  { %941 = vmatpush3.bf16.msra.mxu0 %v938_v15  ;;  %919 = vmatprep.subr.bf16.mxu1 %v918_v19 }
  0xb5   :  { %943 = vmatprep.subr.bf16.mxu0 %v1076_v41  ;;  %840 = vmatprep.mubr.f32.mxu1 %v1052_v7 }
  0xb6   :  { %882 = vmatprep.mubr.f32.mxu0 %v1052_v7  ;;  %841 = vmatmul.mubr.f32.vlgmr.msra.gmra.mrb[0].mxu1 %v1062_v28 }
  0xb7   :  { %883 = vmatmul.mubr.f32.vlgmr.msra.gmra.mrb[0].mxu0 %v1062_v28  ;;  %921 = vmatpush3.bf16.msra.mxu1 %v918_v19 }
  0xb8   :  { %945 = vmatpush3.bf16.msra.mxu0 %v1076_v41  ;;  %923 = vmatprep.subr.bf16.mxu1 %v922_v20 }
  0xb9   :  { %947 = vmatprep.subr.bf16.mxu0 %v906_v63  ;;  %843 = vmatprep.mubr.f32.mxu1 %v1064_v32 }
  0xba   :  { %885 = vmatprep.mubr.f32.mxu0 %v1064_v32  ;;  %844 = vmatmul.mubr.f32.gmra.mrb[2].mxu1 %v1071_v38 }
  0xbb   :  { %886 = vmatmul.mubr.f32.gmra.mrb[2].mxu0 %v1071_v38  ;;  %925 = vmatpush3.bf16.msra.mxu1 %v922_v20 }
  0xbc   :  { %949 = vmatpush3.bf16.msra.mxu0 %v906_v63  ;;  %854 = vmatprep.mubr.f32.mxu1 %v1055_v9 }
  0xbd   :  { %896 = vmatprep.mubr.f32.mxu0 %v1052_v7 }
  0xbe   :  { %855 = vmatmul.mubr.f32.vlgmr.msra.gmra.mrb[0].mxu1 %v1069_v36 }
  0xbf   :  { %897 = vmatmul.mubr.f32.vlgmr.msra.gmra.mrb[0].mxu0 %v1062_v28  ;;  %857 = vmatprep.mubr.f32.mxu1 %v1074_v40  ;;  %v734_v28 = vpop.permute.xlu1 %733 }
  0xc0   :  { %899 = vmatprep.mubr.f32.mxu0 %v1064_v32 }
  0xc2   :  { %858 = vmatmul.mubr.f32.gmra.mrb[2].mxu1 %v1083_v51 }
  0xc3   :  { %900 = vmatmul.mubr.f32.gmra.mrb[2].mxu0 %v1071_v38  ;;  %v738_v48 = vpop.permute.xlu1 %737 }
  0xc7   :  { %v760_v59 = vpop.permute.xlu1 %759 }
 0x191   :  { %v856_v25 = vpop.f32.mrb[0].mxu1 }
 0x192   :  { %v950_v9 = vadd.f32 %v856_v25, %v91_v23  ;;  %v898_v26 = vpop.f32.mrb[0].mxu0  ;;  %v404_v7 = vpop.f32.mrb[1].mxu1 }
 0x193   :  { %v952_v27 = vadd.f32 %v404_v7, %v87_v21  ;;  %v702_v29 = vpop.f32.mrb[1].mxu0 }
 0x194   :  { %v951_v30 = vadd.f32 %v950_v9, %v898_v26 }
 0x195   :  { %v953_v31 = vadd.f32 %v952_v27, %v702_v29  ;;  %v859_v33 = vpop.f32.mrb[2].mxu1 }
 0x196   :  { %v725_v32 = vmax.f32 %v951_v30, 0.0  ;;  %v954_v35 = vadd.f32 %v859_v33, %v99_v24  ;;  %v901_v36 = vpop.f32.mrb[2].mxu0  ;;  %v418_v37 = vpop.f32.mrb[3].mxu1 }
 0x197   :  { %v724_v38 = vmax.f32 %v953_v31, 0.0  ;;  %v956_v39 = vadd.f32 %v418_v37, %v95_v22  ;;  %v714_v40 = vpop.f32.mrb[3].mxu0 }
 0x198   :  { %v745_v41 = vmul.f32 %v734_v28, %v725_v32  ;;  %v955_v42 = vadd.f32 %v954_v35, %v901_v36 }
 0x199   :  { %v957_v43 = vadd.f32 %v956_v39, %v714_v40  ;;  %v744_v44 = vmul.f32 %v730_v34, %v724_v38 }
 0x19a   :  { %v727_v45 = vmax.f32 %v955_v42, 0.0 }
 0x19b   :  { %v726_v46 = vmax.f32 %v957_v43, 0.0  ;;  %v748_v47 = vadd.f32 %v745_v41, %v744_v44 }
 0x19c   :  { %v747_v52 = vmul.f32 %v742_v49, %v727_v45 }
 0x19d   :  { %v746_v50 = vmul.f32 %v738_v48, %v726_v46 }
 0x19f   :  { %v749_v51 = vadd.f32 %v748_v47, %v746_v50 }
 0x1a1   :  { %v750_v53 = vadd.f32 %v749_v51, %v747_v52 }
 0x1a3   :  { %v751_v54 = vrot.slane %v750_v53, 4 }
 0x1a5   :  { %v752_v55 = vadd.f32 %v751_v54, %v750_v53 }
 0x1a7   :  { %v753_v56 = vrot.slane %v752_v55, 2 }
 0x1a9   :  { %v754_v57 = vadd.f32 %v753_v56, %v752_v55 }
 0x1ab   :  { %v755_v58 = vrot.slane %v754_v57, 1 }
 0x1ad   :  { %v756_v60 = vadd.f32 %v755_v58, %v754_v57 }
 0x1af   :  { %v762_v61 = vadd.f32 %v760_v59, %v756_v60 }
 0x1b1   :  { %763 = vst [vmem:[%s1117_s2] sm:$0x1] %v762_v61 }
 0x1b2   :  { %768 = vsyncpa [#allocation3], 1 }

</bundles_post_ra>
